<compile_context>
chip_gen: v7x
topology: tpu7x:2x2x1
jax: 0.10.0
libtpu: 0.0.40
codegen_flags: <defaults>
</compile_context>

<pallas_src>
import jax
import jax.numpy as jnp
from jax.experimental import pallas as pl
from jax.experimental.pallas import tpu as pltpu

IN_FEATURES = 28 * 28        # 784
K_PAD = 896                  # 7 * 128, lane-aligned contraction dim for layer 1
H1 = 128
H2 = 256
NUM_CLASSES = 10
C_PAD = 128                  # padded class dim (lane-dense output)
NEG_BIG = -1e30              # bias padding for fake classes (keeps log_softmax exact)


def _round_up(n, m):
    return ((n + m - 1) // m) * m


def _mlp_kernel(x_ref, w1_ref, b1_ref, w2_ref, b2_ref, w3_ref, b3_ref, o_ref):
    # x_ref: (TB, 896) bf16; weights bf16; biases f32; output (TB, 128) f32.
    x = x_ref[...]

    # layer_1 + relu (MXU bf16, f32 accumulate)
    h1 = jnp.dot(x, w1_ref[...], preferred_element_type=jnp.float32) + b1_ref[...]
    h1 = jnp.maximum(h1, 0.0)                                        # (TB, 128) f32

    # layer_2 + relu
    h2 = jnp.dot(h1.astype(jnp.bfloat16), w2_ref[...],
                 preferred_element_type=jnp.float32) + b2_ref[...]
    h2 = jnp.maximum(h2, 0.0)                                        # (TB, 256) f32

    # layer_3 (padded to 128 classes; fake classes have zero weights, -1e30 bias)
    logits = jnp.dot(h2.astype(jnp.bfloat16), w3_ref[...],
                     preferred_element_type=jnp.float32) + b3_ref[...]  # (TB, 128)

    # log_softmax over the padded class dim; padded lanes contribute exp(~-1e30)=0,
    # so values on the real 10 classes are unchanged.
    m = jnp.max(logits, axis=-1, keepdims=True)
    shifted = logits - m
    lse = jnp.log(jnp.sum(jnp.exp(shifted), axis=-1, keepdims=True))
    o_ref[...] = (shifted - lse).astype(o_ref.dtype)


def mnist_classifier_forward(x_nchw, params, *, block_batch=256):
    """x_nchw: (B, C, H, W) with C*H*W == 784. Returns (B, 10) f32 log-probs."""
    b = x_nchw.shape[0]
    w1, b1, w2, b2, w3, b3 = params

    # Flatten exactly like torch's x.view(batch, -1), pad K 784 -> 896.
    x_flat = x_nchw.reshape(b, -1).astype(jnp.float32)
    x_flat = jnp.pad(x_flat, ((0, 0), (0, K_PAD - IN_FEATURES)))

    # Batch tile: multiple of 8 (f32/bf16 sublane), capped at block_batch.
    tb = min(block_batch, _round_up(b, 8))
    b_pad = _round_up(b, tb)
    if b_pad != b:
        x_flat = jnp.pad(x_flat, ((0, b_pad - b), (0, 0)))
    x_bf16 = x_flat.astype(jnp.bfloat16)

    # Weight prep: bf16 for the MXU, zero-pad K of w1 and class dim of w3;
    # padded class biases get a large negative value so softmax ignores them.
    w1p = jnp.pad(w1, ((0, K_PAD - IN_FEATURES), (0, 0))).astype(jnp.bfloat16)
    w2p = w2.astype(jnp.bfloat16)
    w3p = jnp.pad(w3, ((0, 0), (0, C_PAD - NUM_CLASSES))).astype(jnp.bfloat16)
    b3p = jnp.pad(b3, ((0, 0), (0, C_PAD - NUM_CLASSES)), constant_values=NEG_BIG)

    grid = (b_pad // tb,)
    in_specs = [
        pl.BlockSpec((tb, K_PAD), lambda i: (i, 0)),      # x: tiled over batch
        pl.BlockSpec((K_PAD, H1), lambda i: (0, 0)),      # weights/biases stay resident
        pl.BlockSpec((1, H1), lambda i: (0, 0)),
        pl.BlockSpec((H1, H2), lambda i: (0, 0)),
        pl.BlockSpec((1, H2), lambda i: (0, 0)),
        pl.BlockSpec((H2, C_PAD), lambda i: (0, 0)),
        pl.BlockSpec((1, C_PAD), lambda i: (0, 0)),
    ]
    out_specs = pl.BlockSpec((tb, C_PAD), lambda i: (i, 0))

    out = pl.pallas_call(
        _mlp_kernel,
        out_shape=jax.ShapeDtypeStruct((b_pad, C_PAD), jnp.float32),
        grid=grid,
        in_specs=in_specs,
        out_specs=out_specs,
        compiler_params=pltpu.CompilerParams(
            dimension_semantics=("parallel",),
        ),
    )(x_bf16, w1p, b1, w2p, b2, w3p, b3p)

    return out[:b, :NUM_CLASSES]


def init_params(key):
    """Deterministic init matching torch.nn.Linear shapes (stored as (in, out))."""
    ks = jax.random.split(key, 6)

    def linear(kw, kb, fan_in, fan_out):
        bound = 1.0 / jnp.sqrt(jnp.float32(fan_in))
        w = jax.random.uniform(kw, (fan_in, fan_out), jnp.float32, -bound, bound)
        b = jax.random.uniform(kb, (1, fan_out), jnp.float32, -bound, bound)
        return w, b

    w1, b1 = linear(ks[0], ks[1], IN_FEATURES, H1)
    w2, b2 = linear(ks[2], ks[3], H1, H2)
    w3, b3 = linear(ks[4], ks[5], H2, NUM_CLASSES)
    return (w1, b1, w2, b2, w3, b3)


def _reference_forward_bf16(x_nchw, params):
    """Reference that mirrors the kernel's bf16 matmul / f32 accumulate dtypes."""
    w1, b1, w2, b2, w3, b3 = params
    x = x_nchw.reshape(x_nchw.shape[0], -1).astype(jnp.bfloat16)
    h1 = jnp.maximum(jnp.dot(x, w1.astype(jnp.bfloat16),
                             preferred_element_type=jnp.float32) + b1, 0.0)
    h2 = jnp.maximum(jnp.dot(h1.astype(jnp.bfloat16), w2.astype(jnp.bfloat16),
                             preferred_element_type=jnp.float32) + b2, 0.0)
    logits = jnp.dot(h2.astype(jnp.bfloat16), w3.astype(jnp.bfloat16),
                     preferred_element_type=jnp.float32) + b3
    return jax.nn.log_softmax(logits, axis=1)


def _reference_forward_f32(x_nchw, params):
    w1, b1, w2, b2, w3, b3 = params
    x = x_nchw.reshape(x_nchw.shape[0], -1).astype(jnp.float32)
    h1 = jnp.maximum(x @ w1 + b1, 0.0)
    h2 = jnp.maximum(h1 @ w2 + b2, 0.0)
    logits = h2 @ w3 + b3
    return jax.nn.log_softmax(logits, axis=1)


if __name__ == "__main__":
    key = jax.random.PRNGKey(0)
    k_x, k_p = jax.random.split(key)

    batch = 2
    x = jax.random.normal(k_x, (batch, 1, 28, 28), dtype=jnp.float32)  # NCHW
    params = init_params(k_p)

    out = mnist_classifier_forward(x, params)
    out = jax.block_until_ready(out)

    assert out.shape == (batch, NUM_CLASSES)

    ref_bf16 = _reference_forward_bf16(x, params)
    ref_f32 = _reference_forward_f32(x, params)
    assert jnp.allclose(out, ref_bf16, atol=2e-3, rtol=2e-3), "mismatch vs bf16 reference"
    assert jnp.allclose(out, ref_f32, atol=5e-2, rtol=5e-2), "mismatch vs f32 reference"

    print("KERNEL_OK")
</pallas_src>

<mosaic_0001>
module attributes {stable_mosaic.version = 11 : i64} {
  func.func @_mlp_kernel(%arg0: i32, %arg1: memref<8x896xbf16, #tpu.memory_space<vmem>>, %arg2: memref<896x128xbf16, #tpu.memory_space<vmem>>, %arg3: memref<1x128xf32, #tpu.memory_space<vmem>>, %arg4: memref<128x256xbf16, #tpu.memory_space<vmem>>, %arg5: memref<1x256xf32, #tpu.memory_space<vmem>>, %arg6: memref<256x128xbf16, #tpu.memory_space<vmem>>, %arg7: memref<1x128xf32, #tpu.memory_space<vmem>>, %arg8: memref<8x128xf32, #tpu.memory_space<vmem>>) attributes {dimension_semantics = [#tpu.dimension_semantics<parallel>], iteration_bounds = array<i64: 1>, scalar_prefetch = 0 : i64, scratch_operands = 0 : i64, tpu.core_type = #tpu.core_type<tc>, window_params = [{transform_indices = @transform_0, window_bounds = array<i64: 8, 896>}, {pipeline_mode = #tpu.pipeline_mode<synchronous>, transform_indices = @transform_1, window_bounds = array<i64: 896, 128>}, {pipeline_mode = #tpu.pipeline_mode<synchronous>, transform_indices = @transform_2, window_bounds = array<i64: 1, 128>}, {pipeline_mode = #tpu.pipeline_mode<synchronous>, transform_indices = @transform_3, window_bounds = array<i64: 128, 256>}, {pipeline_mode = #tpu.pipeline_mode<synchronous>, transform_indices = @transform_4, window_bounds = array<i64: 1, 256>}, {pipeline_mode = #tpu.pipeline_mode<synchronous>, transform_indices = @transform_5, window_bounds = array<i64: 256, 128>}, {pipeline_mode = #tpu.pipeline_mode<synchronous>, transform_indices = @transform_6, window_bounds = array<i64: 1, 128>}, {transform_indices = @transform_7, window_bounds = array<i64: 8, 128>}]} {
    %c0 = arith.constant 0 : index
    %c0_0 = arith.constant 0 : index
    %0 = vector.load %arg1[%c0, %c0_0] : memref<8x896xbf16, #tpu.memory_space<vmem>>, vector<8x896xbf16>
    %c0_1 = arith.constant 0 : index
    %c0_2 = arith.constant 0 : index
    %1 = vector.load %arg2[%c0_1, %c0_2] : memref<896x128xbf16, #tpu.memory_space<vmem>>, vector<896x128xbf16>
    %cst = arith.constant dense<0.000000e+00> : vector<8x128xf32>
    %2 = tpu.matmul %0, %1, %cst {dimension_numbers = #tpu.dot_dimension_numbers<[1], [0], [0], [1], [0, 0, 1, 1], [], []>} : vector<8x896xbf16>, vector<896x128xbf16>, vector<8x128xf32> -> vector<8x128xf32>
    %c0_3 = arith.constant 0 : index
    %c0_4 = arith.constant 0 : index
    %3 = vector.load %arg3[%c0_3, %c0_4] : memref<1x128xf32, #tpu.memory_space<vmem>>, vector<1x128xf32>
    %4 = vector.broadcast %3 : vector<1x128xf32> to vector<8x128xf32>
    %5 = arith.addf %2, %4 : vector<8x128xf32>
    %cst_5 = arith.constant 0.000000e+00 : f32
    %6 = vector.broadcast %cst_5 : f32 to vector<8x128xf32>
    %7 = arith.maximumf %5, %6 : vector<8x128xf32>
    %8 = arith.truncf %7 : vector<8x128xf32> to vector<8x128xbf16>
    %c0_6 = arith.constant 0 : index
    %c0_7 = arith.constant 0 : index
    %9 = vector.load %arg4[%c0_6, %c0_7] : memref<128x256xbf16, #tpu.memory_space<vmem>>, vector<128x256xbf16>
    %cst_8 = arith.constant dense<0.000000e+00> : vector<8x256xf32>
    %10 = tpu.matmul %8, %9, %cst_8 {dimension_numbers = #tpu.dot_dimension_numbers<[1], [0], [0], [1], [0, 0, 1, 1], [], []>} : vector<8x128xbf16>, vector<128x256xbf16>, vector<8x256xf32> -> vector<8x256xf32>
    %c0_9 = arith.constant 0 : index
    %c0_10 = arith.constant 0 : index
    %11 = vector.load %arg5[%c0_9, %c0_10] : memref<1x256xf32, #tpu.memory_space<vmem>>, vector<1x256xf32>
    %12 = vector.broadcast %11 : vector<1x256xf32> to vector<8x256xf32>
    %13 = arith.addf %10, %12 : vector<8x256xf32>
    %cst_11 = arith.constant 0.000000e+00 : f32
    %14 = vector.broadcast %cst_11 : f32 to vector<8x256xf32>
    %15 = arith.maximumf %13, %14 : vector<8x256xf32>
    %16 = arith.truncf %15 : vector<8x256xf32> to vector<8x256xbf16>
    %c0_12 = arith.constant 0 : index
    %c0_13 = arith.constant 0 : index
    %17 = vector.load %arg6[%c0_12, %c0_13] : memref<256x128xbf16, #tpu.memory_space<vmem>>, vector<256x128xbf16>
    %cst_14 = arith.constant dense<0.000000e+00> : vector<8x128xf32>
    %18 = tpu.matmul %16, %17, %cst_14 {dimension_numbers = #tpu.dot_dimension_numbers<[1], [0], [0], [1], [0, 0, 1, 1], [], []>} : vector<8x256xbf16>, vector<256x128xbf16>, vector<8x128xf32> -> vector<8x128xf32>
    %c0_15 = arith.constant 0 : index
    %c0_16 = arith.constant 0 : index
    %19 = vector.load %arg7[%c0_15, %c0_16] : memref<1x128xf32, #tpu.memory_space<vmem>>, vector<1x128xf32>
    %20 = vector.broadcast %19 : vector<1x128xf32> to vector<8x128xf32>
    %21 = arith.addf %18, %20 : vector<8x128xf32>
    %cst_17 = arith.constant dense<0xFF800000> : vector<8xf32>
    %22 = vector.multi_reduction <maximumf>, %21, %cst_17 [1] : vector<8x128xf32> to vector<8xf32>
    %23 = vector.shape_cast %22 : vector<8xf32> to vector<8x1xf32>
    %24 = vector.broadcast %23 : vector<8x1xf32> to vector<8x128xf32>
    %25 = arith.subf %21, %24 : vector<8x128xf32>
    %26 = math.exp %25 : vector<8x128xf32>
    %cst_18 = arith.constant dense<0.000000e+00> : vector<8xf32>
    %27 = vector.multi_reduction <add>, %26, %cst_18 [1] : vector<8x128xf32> to vector<8xf32>
    %28 = vector.shape_cast %27 : vector<8xf32> to vector<8x1xf32>
    %29 = math.log %28 : vector<8x1xf32>
    %30 = vector.broadcast %29 : vector<8x1xf32> to vector<8x128xf32>
    %31 = arith.subf %25, %30 : vector<8x128xf32>
    %c0_19 = arith.constant 0 : index
    %c0_20 = arith.constant 0 : index
    %32 = vector.load %arg8[%c0_19, %c0_20] : memref<8x128xf32, #tpu.memory_space<vmem>>, vector<8x128xf32>
    tpu.vector_store %arg8[%c0_19, %c0_20], %31 {strides = array<i32>} : memref<8x128xf32, #tpu.memory_space<vmem>>, vector<8x128xf32>,
    return
  }
  func.func @transform_0(%arg0: i32) -> (i32, i32) {
    %c0_i32 = arith.constant 0 : i32
    %c0_i32_0 = arith.constant 0 : i32
    return %arg0, %c0_i32 : i32, i32
  }
  func.func @transform_1(%arg0: i32) -> (i32, i32) {
    %c0_i32 = arith.constant 0 : i32
    %c0_i32_0 = arith.constant 0 : i32
    %c0_i32_1 = arith.constant 0 : i32
    return %c0_i32, %c0_i32_0 : i32, i32
  }
  func.func @transform_2(%arg0: i32) -> (i32, i32) {
    %c0_i32 = arith.constant 0 : i32
    %c0_i32_0 = arith.constant 0 : i32
    %c0_i32_1 = arith.constant 0 : i32
    return %c0_i32, %c0_i32_0 : i32, i32
  }
  func.func @transform_3(%arg0: i32) -> (i32, i32) {
    %c0_i32 = arith.constant 0 : i32
    %c0_i32_0 = arith.constant 0 : i32
    %c0_i32_1 = arith.constant 0 : i32
    return %c0_i32, %c0_i32_0 : i32, i32
  }
  func.func @transform_4(%arg0: i32) -> (i32, i32) {
    %c0_i32 = arith.constant 0 : i32
    %c0_i32_0 = arith.constant 0 : i32
    %c0_i32_1 = arith.constant 0 : i32
    return %c0_i32, %c0_i32_0 : i32, i32
  }
  func.func @transform_5(%arg0: i32) -> (i32, i32) {
    %c0_i32 = arith.constant 0 : i32
    %c0_i32_0 = arith.constant 0 : i32
    %c0_i32_1 = arith.constant 0 : i32
    return %c0_i32, %c0_i32_0 : i32, i32
  }
  func.func @transform_6(%arg0: i32) -> (i32, i32) {
    %c0_i32 = arith.constant 0 : i32
    %c0_i32_0 = arith.constant 0 : i32
    %c0_i32_1 = arith.constant 0 : i32
    return %c0_i32, %c0_i32_0 : i32, i32
  }
  func.func @transform_7(%arg0: i32) -> (i32, i32) {
    %c0_i32 = arith.constant 0 : i32
    %c0_i32_0 = arith.constant 0 : i32
    return %arg0, %c0_i32 : i32, i32
  }
}

</mosaic_0001>

<bundles_post_ra>
// kernel: tpu_custom_call.1
= control target key start
LH: loop header
LB: loop body
LE: loop exit
PB: predicated region body
PF: predicated region fallthrough
CT: control target
= control target key end

     0   :  { %12 = vsyncpa [#allocation3], 0  ;;  %s1661_s0 = inlined_call_operand.hbm [shape: bf16[8,896], index: 0, kind: input, shape index: {}]   ;;  %s1662_s1 = inlined_call_operand.hbm [shape: bf16[896,128], index: 1, kind: input, shape index: {}]   ;;  %s1663_s2 = inlined_call_operand.vmem [shape: f32[1,128], index: 2, kind: input, shape index: {}]   ;;  %s1664_s3 = inlined_call_operand.hbm [shape: bf16[128,256], index: 3, kind: input, shape index: {}]   ;;  %s1665_s4 = inlined_call_operand.vmem [shape: f32[1,256], index: 4, kind: input, shape index: {}]   ;;  %s1666_s5 = inlined_call_operand.hbm [shape: bf16[256,128], index: 5, kind: input, shape index: {}]   ;;  %s1667_s6 = inlined_call_operand.vmem [shape: f32[1,128], index: 6, kind: input, shape index: {}]   ;;  %s1668_s7 = inlined_call_operand.hbm [shape: f32[8,128], index: 7, kind: output, shape index: {}]  }
   0x1   :  { %13 = vsyncpa [#allocation6], 0 }
   0x2   :  { %14 = vsyncpa [#allocation9], 0 }
   0x3   :  { %15 = vsyncpa [#allocation4], 0  ;;  %s1534_s24 = smov [#allocation5]   ;;  %s1416_s28 = scalar_lea.hbm %s1662_s1, 7168 }
   0x4   :  { %s31_s25 = sshll.u32 %s1534_s24, 4  ;;  %p1417_p0 = scmp.ne.s32.totalorder %s1662_s1, %s1416_s28  ;;  %s32_s25 = int_to_ptr.vmem [resolvable:$true] %s31_s25 }
   0x5   :  { %p1420_p1 = scmp.lt.u32.totalorder %s1416_s28, %s1662_s1 }
   0x7   :  { %p1422_p2 = pnand %p1420_p1, %p1417_p0 }
   0x9   :  { %1425 = shalt.err (!%p1422_p2)
}
   0xa   :  { %s1426_s10 = scalar_lea.vmem %s32_s25, 7168  ;;  %p1431_p4 = scmp.lt.s32.totalorder %s32_s25, %s32_s25 }
   0xb   :  { %p1427_p3 = scmp.ne.s32.totalorder %s32_s25, %s1426_s10  ;;  %p1432_p5 = scmp.lt.s32.totalorder %s1426_s10, %s1426_s10 }
   0xd   :  { %p1433_p6 = por %p1432_p5, %p1431_p4 }
   0xf   :  { %p1434_p7 = pnand %p1433_p6, %p1427_p3 }
  0x11   :  { %1437 = shalt.err (!%p1434_p7)
}
  0x12   :  { %s1535_s11 = smov 64   ;;  %s1536_s12 = smov 4  }
  0x13   :  { %37 = dma.hbm_to_vmem [thread:$0]  %s1662_s1, 7168, %s32_s25, [#allocation6], %s1535_s11, %s1535_s11, %s1536_s12  }
  0x14   :  { %s1537_s15 = smov [#allocation2]   ;;  %s1538_s17 = smov [#allocation7]  }
  0x15   :  { %s22_s16 = sshll.u32 %s1537_s15, 4  ;;  %s45_s18 = sshll.u32 %s1538_s17, 4  ;;  %s23_s16 = int_to_ptr.vmem [resolvable:$true] %s22_s16  ;;  %s46_s18 = int_to_ptr.vmem [resolvable:$true] %s45_s18 }
  0x16   :  { %s1438_s21 = scalar_lea.hbm %s1661_s0, 448 }
  0x17   :  { %p1439_p8 = scmp.ne.s32.totalorder %s1661_s0, %s1438_s21  ;;  %p1442_p9 = scmp.lt.u32.totalorder %s1438_s21, %s1661_s0 }
  0x19   :  { %p1444_p10 = pnand %p1442_p9, %p1439_p8 }
  0x1b   :  { %1447 = shalt.err (!%p1444_p10)
}
  0x1c   :  { %s1448_s1 = scalar_lea.vmem %s23_s16, 448  ;;  %p1453_p12 = scmp.lt.s32.totalorder %s23_s16, %s23_s16 }
  0x1d   :  { %p1449_p11 = scmp.ne.s32.totalorder %s23_s16, %s1448_s1  ;;  %p1454_p13 = scmp.lt.s32.totalorder %s1448_s1, %s1448_s1 }
  0x1f   :  { %p1455_p0 = por %p1454_p13, %p1453_p12 }
  0x21   :  { %p1456_p1 = pnand %p1455_p0, %p1449_p11 }
  0x23   :  { %1459 = shalt.err (!%p1456_p1)
}
  0x24   :  { %25 = dma.hbm_to_vmem [thread:$0]  %s1661_s0, 448, %s23_s16, [#allocation3]  }
  0x25   :  { %s1460_s30 = scalar_lea.hbm %s1664_s3, 2048 }
  0x26   :  { %p1461_p2 = scmp.ne.s32.totalorder %s1664_s3, %s1460_s30  ;;  %p1464_p3 = scmp.lt.u32.totalorder %s1460_s30, %s1664_s3 }
  0x28   :  { %p1466_p4 = pnand %p1464_p3, %p1461_p2 }
  0x2a   :  { %1469 = shalt.err (!%p1466_p4)
}
  0x2b   :  { %s1470_s14 = scalar_lea.vmem %s46_s18, 2048  ;;  %p1475_p6 = scmp.lt.s32.totalorder %s46_s18, %s46_s18 }
  0x2c   :  { %p1471_p5 = scmp.ne.s32.totalorder %s46_s18, %s1470_s14  ;;  %p1476_p7 = scmp.lt.s32.totalorder %s1470_s14, %s1470_s14 }
  0x2e   :  { %p1477_p8 = por %p1476_p7, %p1475_p6 }
  0x30   :  { %p1478_p9 = pnand %p1477_p8, %p1471_p5 }
  0x32   :  { %1481 = shalt.err (!%p1478_p9)
}
  0x33   :  { %s1539_s0 = smov 128   ;;  %s1540_s15 = smov 8  }
  0x34   :  { %51 = dma.hbm_to_vmem [thread:$0]  %s1664_s3, 2048, %s46_s18, [#allocation6], %s1539_s0, %s1539_s0, %s1540_s15  }
  0x35   :  { %s1541_s19 = smov [#allocation8]   ;;  %s1482_s23 = scalar_lea.hbm %s1666_s5, 2048 }
  0x36   :  { %s59_s20 = sshll.u32 %s1541_s19, 4  ;;  %p1483_p10 = scmp.ne.s32.totalorder %s1666_s5, %s1482_s23  ;;  %s60_s20 = int_to_ptr.vmem [resolvable:$true] %s59_s20 }
  0x37   :  { %p1486_p11 = scmp.lt.u32.totalorder %s1482_s23, %s1666_s5 }
  0x39   :  { %p1488_p12 = pnand %p1486_p11, %p1483_p10 }
  0x3b   :  { %1491 = shalt.err (!%p1488_p12)
}
  0x3c   :  { %s1492_s27 = scalar_lea.vmem %s60_s20, 2048  ;;  %p1497_p0 = scmp.lt.s32.totalorder %s60_s20, %s60_s20 }
  0x3d   :  { %p1493_p13 = scmp.ne.s32.totalorder %s60_s20, %s1492_s27  ;;  %p1498_p1 = scmp.lt.s32.totalorder %s1492_s27, %s1492_s27 }
  0x3f   :  { %p1499_p2 = por %p1498_p1, %p1497_p0 }
  0x41   :  { %p1500_p3 = pnand %p1499_p2, %p1493_p13 }
  0x43   :  { %1503 = shalt.err (!%p1500_p3)
}
  0x44   :  { %65 = dma.hbm_to_vmem [thread:$0]  %s1666_s5, 2048, %s60_s20, [#allocation9], %s1535_s11, %s1535_s11, %s1536_s12  }
  0x45   :  { %1526 = dma.done.wait [#allocation3], 448  }
  0x46   :  { %1527 = vsyncadd [#allocation3], 4294966848 }
  0x47   :  { %1528 = dma.done.wait [#allocation6], 9216  }
  0x48   :  { %1529 = vsyncadd [#allocation6], 4294958080 }
  0x49   :  { %1530 = dma.done.wait [#allocation9], 2048  }
  0x4a   :  { %1531 = vsyncadd [#allocation9], 4294965248  ;;  %v1309_v0 = vld [vmem:[#allocation5 + $0x40] sm:$0xff]   ;;  %v1313_v4 = vld [vmem:[#allocation5 + $0x48] sm:$0xff]   ;;  %v1542_v42 = vmov 0.0   ;;  %vm1543_vm0 = vmmov 0  }
  0x4b   :  { %v1310_v1 = vld [vmem:[#allocation5] sm:$0xff]   ;;  %1180 = vmatprep.subr.bf16.mxu0 %v1309_v0  ;;  %v1314_v5 = vld [vmem:[#allocation5 + $0x8] sm:$0xff]   ;;  %v1317_v8 = vld [vmem:[#allocation5 + $0x50] sm:$0xff]  }
  0x4c   :  { %v1311_v2 = vld [vmem:[#allocation5 + $0xc0] sm:$0xff]   ;;  %1181 = vmatpush3.bf16.msra.mxu0 %v1310_v1  ;;  %v1315_v6 = vld [vmem:[#allocation5 + $0xc8] sm:$0xff]   ;;  %v1318_v9 = vld [vmem:[#allocation5 + $0x10] sm:$0xff]  }
  0x4d   :  { %v1312_v3 = vld [vmem:[#allocation5 + $0x80] sm:$0xff]   ;;  %1202 = vmatprep.subr.bf16.mxu1 %v1311_v2  ;;  %1182 = vmatprep.subr.bf16.mxu0 %v1313_v4  ;;  %v1316_v7 = vld [vmem:[#allocation5 + $0x88] sm:$0xff]   ;;  %v1319_v10 = vld [vmem:[#allocation5 + $0xd0] sm:$0xff]  }
  0x4e   :  { %1203 = vmatpush3.bf16.msra.mxu1 %v1312_v3  ;;  %v1320_v11 = vld [vmem:[#allocation5 + $0x90] sm:$0xff]   ;;  %v1321_v12 = vld [vmem:[#allocation5 + $0x58] sm:$0xff]   ;;  %v1325_v16 = vld [vmem:[#allocation5 + $0x60] sm:$0xff]  }
  0x4f   :  { %1204 = vmatprep.subr.bf16.mxu1 %v1315_v6  ;;  %v1322_v13 = vld [vmem:[#allocation5 + $0x18] sm:$0xff]   ;;  %v1326_v17 = vld [vmem:[#allocation5 + $0x20] sm:$0xff]   ;;  %v1329_v20 = vld [vmem:[#allocation5 + $0x68] sm:$0xff]  }
  0x50   :  { %1183 = vmatpush3.bf16.msra.mxu0 %v1314_v5  ;;  %v1323_v14 = vld [vmem:[#allocation5 + $0xd8] sm:$0xff]   ;;  %v1327_v18 = vld [vmem:[#allocation5 + $0xe0] sm:$0xff]   ;;  %v1330_v21 = vld [vmem:[#allocation5 + $0x28] sm:$0xff]  }
  0x51   :  { %1184 = vmatprep.subr.bf16.mxu0 %v1317_v8  ;;  %v1324_v15 = vld [vmem:[#allocation5 + $0x98] sm:$0xff]   ;;  %v1328_v19 = vld [vmem:[#allocation5 + $0xa0] sm:$0xff]   ;;  %v1331_v22 = vld [vmem:[#allocation5 + $0xe8] sm:$0xff]  }
  0x52   :  { %1205 = vmatpush3.bf16.msra.mxu1 %v1316_v7  ;;  %v1332_v23 = vld [vmem:[#allocation5 + $0xa8] sm:$0xff]   ;;  %v1333_v24 = vld [vmem:[#allocation5 + $0x70] sm:$0xff]   ;;  %v1337_v28 = vld [vmem:[#allocation5 + $0x78] sm:$0xff]  }
  0x53   :  { %1206 = vmatprep.subr.bf16.mxu1 %v1319_v10  ;;  %v1334_v25 = vld [vmem:[#allocation5 + $0x30] sm:$0xff]   ;;  %v1338_v29 = vld [vmem:[#allocation5 + $0x38] sm:$0xff]   ;;  %v81_v31 = vld [vmem:[#allocation2] sm:$0xff] }
  0x54   :  { %1185 = vmatpush3.bf16.msra.mxu0 %v1318_v9  ;;  %v1335_v26 = vld [vmem:[#allocation5 + $0xf0] sm:$0xff]   ;;  %v1339_v30 = vld [vmem:[#allocation5 + $0xf8] sm:$0xff]   ;;  %v1084_v32 = vcombine.low %v81_v31, %v81_v31  ;;  %v1085_v33 = vcombine.high %v81_v31, %v81_v31  ;;  %v1343_v35 = vld [vmem:[#allocation5 + $0x140] sm:$0xff]  }
  0x55   :  { %1186 = vmatprep.subr.bf16.mxu0 %v1321_v12  ;;  %v1336_v27 = vld [vmem:[#allocation5 + $0xb0] sm:$0xff]   ;;  %v1342_v34 = vld [vmem:[#allocation5 + $0xb8] sm:$0xff]   ;;  %v1346_v39 = vld [vmem:[#allocation5 + $0x100] sm:$0xff]  }
  0x56   :  { %1207 = vmatpush3.bf16.msra.mxu1 %v1320_v11  ;;  %v82_v36 = vld [vmem:[#allocation2 + $0x8] sm:$0xff]  ;;  %597 = vmatprep.mubr.bf16.mxu0 %v1085_v33  ;;  %v1347_v40 = vld [vmem:[#allocation5 + $0x180] sm:$0xff]   ;;  %v1354_v48 = vld [vmem:[#allocation5 + $0x158] sm:$0xff]  }
  0x57   :  { %1208 = vmatprep.subr.bf16.mxu1 %v1323_v14  ;;  %v1086_v37 = vcombine.low %v82_v36, %v82_v36  ;;  %v1087_v38 = vcombine.high %v82_v36, %v82_v36  ;;  %v1348_v41 = vld [vmem:[#allocation5 + $0x148] sm:$0xff]   ;;  %v1351_v45 = vld [vmem:[#allocation5 + $0x150] sm:$0xff]   ;;  %v1355_v49 = vld [vmem:[#allocation5 + $0x118] sm:$0xff]  }
  0x58   :  { %1187 = vmatpush3.bf16.msra.mxu0 %v1322_v13  ;;  %v1349_v43 = vld [vmem:[#allocation5 + $0x108] sm:$0xff]   ;;  %v1352_v46 = vld [vmem:[#allocation5 + $0x110] sm:$0xff]   ;;  %v1357_v50 = vld [vmem:[#allocation5 + $0x160] sm:$0xff]  }
  0x59   :  { %1188 = vmatprep.subr.bf16.mxu0 %v1325_v16  ;;  %637 = vmatprep.mubr.bf16.mxu1 %v1087_v38  ;;  %v1350_v44 = vld [vmem:[#allocation5 + $0x188] sm:$0xff]   ;;  %v1353_v47 = vld [vmem:[#allocation5 + $0x190] sm:$0xff]   ;;  %v1356_v51 = vld [vmem:[#allocation5 + $0x198] sm:$0xff]  }
  0x5a   :  { %1209 = vmatpush3.bf16.msra.mxu1 %v1324_v15  ;;  %v1358_v52 = vld [vmem:[#allocation5 + $0x120] sm:$0xff]   ;;  %v1360_v53 = vld [vmem:[#allocation5 + $0x168] sm:$0xff]   ;;  %v1363_v56 = vld [vmem:[#allocation5 + $0x170] sm:$0xff]  }
  0x5b   :  { %1210 = vmatprep.subr.bf16.mxu1 %v1327_v18  ;;  %v1359_v54 = vld [vmem:[#allocation5 + $0x1a0] sm:$0xff]   ;;  %v1361_v55 = vld [vmem:[#allocation5 + $0x128] sm:$0xff]   ;;  %v1364_v58 = vld [vmem:[#allocation5 + $0x130] sm:$0xff]  }
  0x5c   :  { %1189 = vmatpush3.bf16.msra.mxu0 %v1326_v17  ;;  %v1362_v57 = vld [vmem:[#allocation5 + $0x1a8] sm:$0xff]   ;;  %v83_v59 = vld [vmem:[#allocation2 + $0x10] sm:$0xff]  ;;  %v1371_v2 = vld [vmem:[#allocation2 + $0x18] ss:$0 sps:$4 sm:$0xff]  }
  0x5d   :  { %1190 = vmatprep.subr.bf16.mxu0 %v1329_v20  ;;  %v1365_v60 = vld [vmem:[#allocation5 + $0x1b0] sm:$0xff]   ;;  %v1089_v61 = vcombine.high %v83_v59, %v83_v59  ;;  %v1366_v62 = vld [vmem:[#allocation5 + $0x178] sm:$0xff]   ;;  %v1088_v1 = vcombine.low %v83_v59, %v83_v59  ;;  %v1372_v3 = vld [vmem:[#allocation7] ss:$8 sps:$4 sm:$0xff]  }
  0x5e   :  { %1211 = vmatpush3.bf16.msra.mxu1 %v1328_v19  ;;  %v1367_v63 = vld [vmem:[#allocation5 + $0x138] sm:$0xff]   ;;  %v1374_v4 = vld [vmem:[#allocation7 + $0x4] ss:$8 sps:$4 sm:$0xff]   ;;  %v1378_v8 = vld [vmem:[#allocation7 + $0x20] ss:$8 sps:$4 sm:$0xff]   ;;  %v1544_v19 = vmov 0  }
  0x5f   :  { %1212 = vmatprep.subr.bf16.mxu1 %v1331_v22  ;;  %v1370_v0 = vld [vmem:[#allocation5 + $0x1b8] sm:$0xff]   ;;  %v1380_v7 = vld [vmem:[#allocation7 + $0x24] ss:$8 sps:$4 sm:$0xff]   ;;  %v1384_v12 = vld [vmem:[#allocation7 + $0x40] ss:$8 sps:$4 sm:$0xff]  }
  0x60   :  { %1191 = vmatpush3.bf16.msra.mxu0 %v1330_v21  ;;  %v1377_v5 = vld [vmem:[#allocation7 + $0x14] ss:$8 sps:$4 sm:$0xff]   ;;  %v1375_v6 = vld [vmem:[#allocation7 + $0x10] ss:$8 sps:$4 sm:$0xff]   ;;  %v1386_v11 = vld [vmem:[#allocation7 + $0x44] ss:$8 sps:$4 sm:$0xff]  }
  0x61   :  { %1192 = vmatprep.subr.bf16.mxu0 %v1333_v24  ;;  %v1383_v9 = vld [vmem:[#allocation7 + $0x34] ss:$8 sps:$4 sm:$0xff]   ;;  %v1381_v10 = vld [vmem:[#allocation7 + $0x30] ss:$8 sps:$4 sm:$0xff]   ;;  %v1392_v15 = vld [vmem:[#allocation7 + $0x64] ss:$8 sps:$4 sm:$0xff]  }
  0x62   :  { %1213 = vmatpush3.bf16.msra.mxu1 %v1332_v23  ;;  %v1389_v13 = vld [vmem:[#allocation7 + $0x54] ss:$8 sps:$4 sm:$0xff]   ;;  %v1387_v14 = vld [vmem:[#allocation7 + $0x50] ss:$8 sps:$4 sm:$0xff]   ;;  %v1390_v16 = vld [vmem:[#allocation7 + $0x60] ss:$8 sps:$4 sm:$0xff]  }
  0x63   :  { %1214 = vmatprep.subr.bf16.mxu1 %v1335_v26  ;;  %v1395_v17 = vld [vmem:[#allocation7 + $0x74] ss:$8 sps:$4 sm:$0xff]   ;;  %v1393_v18 = vld [vmem:[#allocation7 + $0x70] ss:$8 sps:$4 sm:$0xff]   ;;  %v1396_v20 = vld [vmem:[#allocation8 + $0x40] sm:$0xff]  }
  0x64   :  { %1193 = vmatpush3.bf16.msra.mxu0 %v1334_v25  ;;  %v1397_v21 = vld [vmem:[#allocation8] sm:$0xff]   ;;  %v1398_v22 = vld [vmem:[#allocation8 + $0x48] sm:$0xff]   ;;  %v1400_v24 = vld [vmem:[#allocation8 + $0x50] sm:$0xff]  }
  0x65   :  { %1194 = vmatprep.subr.bf16.mxu0 %v1337_v28  ;;  %v1399_v23 = vld [vmem:[#allocation8 + $0x8] sm:$0xff]   ;;  %v1401_v25 = vld [vmem:[#allocation8 + $0x10] sm:$0xff]   ;;  %v1402_v26 = vld [vmem:[#allocation8 + $0x58] sm:$0xff]  }
  0x66   :  { %1215 = vmatpush3.bf16.msra.mxu1 %v1336_v27  ;;  %v1403_v27 = vld [vmem:[#allocation8 + $0x18] sm:$0xff]   ;;  %v1404_v28 = vld [vmem:[#allocation8 + $0x60] sm:$0xff]   ;;  %v1407_v31 = vld [vmem:[#allocation8 + $0x28] sm:$0xff]  }
  0x67   :  { %1216 = vmatprep.subr.bf16.mxu1 %v1339_v30  ;;  %v1406_v30 = vld [vmem:[#allocation8 + $0x68] sm:$0xff]   ;;  %v1083_v33 = vld [vmem:[%s1663_s2] ss:$0 sm:$0xff]  ;;  %v1409_v59 = vld [vmem:[#allocation8 + $0x30] sm:$0xff]  }
  0x68   :  { %1195 = vmatpush3.bf16.msra.mxu0 %v1338_v29  ;;  %v1405_v29 = vld [vmem:[#allocation8 + $0x20] sm:$0xff]  }
  0x69   :  { %1224 = vmatprep.subr.bf16.mxu0 %v1343_v35 }
  0x6a   :  { %1217 = vmatpush3.bf16.msra.mxu1 %v1342_v34 }
  0x6b   :  { %598 = vmatmul.mubr.bf16.vlgmr.msra.gmra.mrb[0].mxu0 %v1084_v32  ;;  %1277 = vmatprep.subr.bf16.mxu1 %v1542_v42 }
  0x6c   :  { %1225 = vmatpush3.bf16.msra.mxu0 %v1346_v39  ;;  %677 = vmatprep.mubr.bf16.mxu0 %v1089_v61  ;;  %v1411_v61 = vld [vmem:[#allocation8 + $0x38] sm:$0xff]  }
  0x6d   :  { %638 = vmatmul.mubr.bf16.vlgmr.msra.gmra.mrb[0].mxu1 %v1086_v37  ;;  %1226 = vmatprep.subr.bf16.mxu0 %v1348_v41 }
  0x6e   :  { %1278 = vmatpush3.bf16.msra.mxu1 %v1347_v40  ;;  %1293 = vmatprep.mubr.msk.bf16.mxu1 %vm1543_vm0, %v1542_v42 }
  0x6f   :  { %1279 = vmatprep.subr.bf16.mxu1 %v1542_v42 }
  0x70   :  { %1227 = vmatpush3.bf16.msra.mxu0 %v1349_v43 }
  0x71   :  { %1228 = vmatprep.subr.bf16.mxu0 %v1351_v45 }
  0x72   :  { %1280 = vmatpush3.bf16.msra.mxu1 %v1350_v44 }
  0x73   :  { %1281 = vmatprep.subr.bf16.mxu1 %v1542_v42 }
  0x74   :  { %1229 = vmatpush3.bf16.msra.mxu0 %v1352_v46 }
  0x75   :  { %1230 = vmatprep.subr.bf16.mxu0 %v1354_v48 }
  0x76   :  { %1282 = vmatpush3.bf16.msra.mxu1 %v1353_v47 }
  0x77   :  { %1283 = vmatprep.subr.bf16.mxu1 %v1542_v42 }
  0x78   :  { %1231 = vmatpush3.bf16.msra.mxu0 %v1355_v49 }
  0x79   :  { %1232 = vmatprep.subr.bf16.mxu0 %v1357_v50 }
  0x7a   :  { %1284 = vmatpush3.bf16.msra.mxu1 %v1356_v51 }
  0x7b   :  { %1285 = vmatprep.subr.bf16.mxu1 %v1542_v42 }
  0x7c   :  { %1233 = vmatpush3.bf16.msra.mxu0 %v1358_v52 }
  0x7d   :  { %1234 = vmatprep.subr.bf16.mxu0 %v1360_v53 }
  0x7e   :  { %1286 = vmatpush3.bf16.msra.mxu1 %v1359_v54 }
  0x7f   :  { %1287 = vmatprep.subr.bf16.mxu1 %v1542_v42 }
  0x80   :  { %1235 = vmatpush3.bf16.msra.mxu0 %v1361_v55 }
  0x81   :  { %1236 = vmatprep.subr.bf16.mxu0 %v1363_v56 }
  0x82   :  { %1288 = vmatpush3.bf16.msra.mxu1 %v1362_v57 }
  0x83   :  { %1289 = vmatprep.subr.bf16.mxu1 %v1542_v42 }
  0x84   :  { %1237 = vmatpush3.bf16.msra.mxu0 %v1364_v58  ;;  %v1408_v58 = vld [vmem:[#allocation8 + $0x70] sm:$0xff]  }
  0x85   :  { %1238 = vmatprep.subr.bf16.mxu0 %v1366_v62  ;;  %v745_v62 = vlaneseq }
  0x86   :  { %1290 = vmatpush3.bf16.msra.mxu1 %v1365_v60  ;;  %v1410_v60 = vld [vmem:[#allocation8 + $0x78] sm:$0xff]  }
  0x87   :  { %1291 = vmatprep.subr.bf16.mxu1 %v1542_v42 }
  0x88   :  { %1239 = vmatpush3.bf16.msra.mxu0 %v1367_v63  ;;  %v746_v63 = vshrl.u32 %v745_v62, 7 }
  0x89   :  { %835 = vmatprep.subr.bf16.mxu0 %v1374_v4 }
  0x8a   :  { %1292 = vmatpush3.bf16.msra.mxu1 %v1370_v0  ;;  %v747_v0 = vsub.s32 0, %v746_v63 }
  0x8b   :  { %678 = vmatmul.mubr.bf16.vlgmr.msra.gmra.mrb[4].mxu0 %v1088_v1  ;;  %1255 = vmatprep.subr.bf16.mxu1 %v1396_v20  ;;  %v743_v1 = vld [vmem:[%s1665_s4] sm:$0x3]  ;;  %s1545_s4 = smov [#allocation10]  }
  0x8c   :  { %836 = vmatpush1.bf16.msra.mxu0 %v1372_v3  ;;  %867 = vmatprep.mubr.bf16.mxu0 %v1544_v19  ;;  %v748_v3 = vrot.slane %v743_v1, %v747_v0  ;;  %s1072_s30 = sshll.u32 %s1545_s4, 4  ;;  %s1073_s30 = int_to_ptr.vmem [resolvable:$true] %s1072_s30 }
  0x8d   :  { %1294 = vmatmul.mubr.bf16.vlgmr.msra.gmra.mrb[4].mxu1 %v1371_v2  ;;  %837 = vmatprep.subr.bf16.mxu0 %v1377_v5  ;;  %v751_v2 = vsub.s32 1, %v746_v63  ;;  %p1509_p5 = scmp.lt.s32.totalorder %s1073_s30, %s1073_s30 }
  0x8e   :  { %1256 = vmatpush3.bf16.msra.mxu1 %v1397_v21 }
  0x8f   :  { %1257 = vmatprep.subr.bf16.mxu1 %v1398_v22  ;;  %v752_v4 = vrot.slane %v743_v1, %v751_v2 }
  0x90   :  { %838 = vmatpush1.bf16.msra.mxu0 %v1375_v6 }
  0x91   :  { %839 = vmatprep.subr.bf16.mxu0 %v1380_v7 }
  0x92   :  { %1258 = vmatpush3.bf16.msra.mxu1 %v1399_v23 }
  0x93   :  { %1259 = vmatprep.subr.bf16.mxu1 %v1400_v24 }
  0x94   :  { %840 = vmatpush1.bf16.msra.mxu0 %v1378_v8 }
  0x95   :  { %841 = vmatprep.subr.bf16.mxu0 %v1383_v9 }
  0x96   :  { %1260 = vmatpush3.bf16.msra.mxu1 %v1401_v25 }
  0x97   :  { %1261 = vmatprep.subr.bf16.mxu1 %v1402_v26 }
  0x98   :  { %842 = vmatpush1.bf16.msra.mxu0 %v1381_v10 }
  0x99   :  { %843 = vmatprep.subr.bf16.mxu0 %v1386_v11 }
  0x9a   :  { %1262 = vmatpush3.bf16.msra.mxu1 %v1403_v27 }
  0x9b   :  { %1263 = vmatprep.subr.bf16.mxu1 %v1404_v28 }
  0x9c   :  { %844 = vmatpush1.bf16.msra.mxu0 %v1384_v12 }
  0x9d   :  { %845 = vmatprep.subr.bf16.mxu0 %v1389_v13 }
  0x9e   :  { %1264 = vmatpush3.bf16.msra.mxu1 %v1405_v29 }
  0x9f   :  { %1265 = vmatprep.subr.bf16.mxu1 %v1406_v30 }
  0xa0   :  { %846 = vmatpush1.bf16.msra.mxu0 %v1387_v14 }
  0xa1   :  { %847 = vmatprep.subr.bf16.mxu0 %v1392_v15 }
  0xa2   :  { %1266 = vmatpush3.bf16.msra.mxu1 %v1407_v31 }
  0xa3   :  { %1267 = vmatprep.subr.bf16.mxu1 %v1408_v58 }
  0xa4   :  { %848 = vmatpush1.bf16.msra.mxu0 %v1390_v16 }
  0xa5   :  { %849 = vmatprep.subr.bf16.mxu0 %v1395_v17  ;;  %v1163_v17 = vld [vmem:[%s1667_s6] ss:$0 sm:$0xff]  ;;  %s1504_s6 = scalar_lea.vmem %s1073_s30, 128 }
  0xa6   :  { %1268 = vmatpush3.bf16.msra.mxu1 %v1409_v59  ;;  %p1505_p4 = scmp.ne.s32.totalorder %s1073_s30, %s1504_s6  ;;  %p1510_p6 = scmp.lt.s32.totalorder %s1504_s6, %s1504_s6 }
  0xa7   :  { %1269 = vmatprep.subr.bf16.mxu1 %v1410_v60 }
  0xa8   :  { %850 = vmatpush1.bf16.msra.mxu0 %v1393_v18  ;;  %p1511_p7 = por %p1510_p6, %p1509_p5 }
  0xaa   :  { %1270 = vmatpush3.bf16.msra.mxu1 %v1411_v61  ;;  %p1512_p8 = pnand %p1511_p7, %p1505_p4 }
 0x13e   :  { %v1196_v32 = vpop.f32.mrb[0].mxu0 }
 0x13f   :  { %v1197_v34 = vpop.f32.mrb[1].mxu0 }
 0x140   :  { %v1198_v35 = vadd.f32 %v1197_v34, %v1196_v32  ;;  %v1199_v36 = vpop.f32.mrb[2].mxu0  ;;  %v1218_v37 = vpop.f32.mrb[0].mxu1 }
 0x141   :  { %v1200_v38 = vpop.f32.mrb[3].mxu0  ;;  %v1219_v39 = vpop.f32.mrb[1].mxu1 }
 0x142   :  { %v600_v40 = vadd.f32 %v1198_v35, %v1083_v33  ;;  %v1220_v41 = vadd.f32 %v1219_v39, %v1218_v37  ;;  %v1221_v42 = vpop.f32.mrb[2].mxu1 }
 0x143   :  { %v1222_v43 = vpop.f32.mrb[3].mxu1 }
 0x144   :  { %v640_v44 = vadd.f32 %v1220_v41, %v600_v40 }
 0x15e   :  { %v1240_v45 = vpop.f32.mrb[4].mxu0 }
 0x15f   :  { %v1241_v46 = vpop.f32.mrb[5].mxu0 }
 0x160   :  { %v1242_v47 = vadd.f32 %v1241_v46, %v1240_v45  ;;  %v1243_v48 = vpop.f32.mrb[6].mxu0  ;;  %v719_v49 = vpop.f32.mrb[4].mxu1 }
 0x161   :  { %v1244_v50 = vpop.f32.mrb[7].mxu0  ;;  %v1295_v51 = vpop.f32.mrb[5].mxu1 }
 0x162   :  { %v680_v52 = vadd.f32 %v1242_v47, %v640_v44  ;;  %v722_v53 = vpop.f32.mrb[6].mxu1 }
 0x163   :  { %v1296_v54 = vpop.f32.mrb[7].mxu1 }
 0x164   :  { %v720_v55 = vadd.f32 %v719_v49, %v680_v52 }
 0x166   :  { %v725_v56 = vmax.f32 %v720_v55, 0.0 }
 0x168   :  { %v726_v57 = vpack.c.bf16 %v725_v56, %v725_v56 }
 0x16a   :  { %868 = vmatmul.mubr.bf16.vlgmr.msra.gmra.mrb[8].mxu0 %v726_v57 }
 0x23d   :  { %v869_v5 = vpop.f32.mrb[8].mxu0 }
 0x23e   :  { %v870_v6 = vadd.f32 %v869_v5, %v748_v3  ;;  %v871_v7 = vpop.f32.mrb[9].mxu0 }
 0x23f   :  { %v872_v8 = vadd.f32 %v871_v7, %v752_v4  ;;  %v873_v9 = vpop.f32.mrb[10].mxu0 }
 0x240   :  { %v876_v10 = vmax.f32 %v870_v6, 0.0  ;;  %v874_v11 = vpop.f32.mrb[11].mxu0 }
 0x241   :  { %v877_v12 = vmax.f32 %v872_v8, 0.0 }
 0x242   :  { %v878_v14 = vpack.c.bf16 %v876_v10, %v876_v10 }
 0x243   :  { %v879_v13 = vpack.c.bf16 %v877_v12, %v877_v12 }
 0x245   :  { %1047 = vmatprep.mubr.bf16.mxu1 %v879_v13 }
 0x246   :  { %1048 = vmatmul.mubr.bf16.vlgmr.msra.gmra.mrb[8].mxu1 %v878_v14 }
 0x319   :  { %v1271_v15 = vpop.f32.mrb[8].mxu1 }
 0x31a   :  { %v1272_v16 = vpop.f32.mrb[9].mxu1 }
 0x31b   :  { %v1273_v18 = vadd.f32 %v1272_v16, %v1271_v15  ;;  %v1274_v19 = vpop.f32.mrb[10].mxu1 }
 0x31c   :  { %v1275_v20 = vpop.f32.mrb[11].mxu1 }
 0x31d   :  { %v1050_v21 = vadd.f32 %v1273_v18, %v1163_v17 }
 0x31f   :  { %1055 = vmax.xlane.f32.xlu0 %v1050_v21 }
 0x3ac   :  { %v1056_v22 = vpop.xlane.xlu0 %1055 }
 0x3ad   :  { %v1057_v23 = vsub.f32 %v1050_v21, %v1056_v22 }
 0x3af   :  { %v1058_v24 = vmul.f32 1.442695, %v1057_v23 }
 0x3b1   :  { %1412 = vpow2.f32 %v1058_v24 }
 0x3bb   :  { %v1413_v25 = vpop.eup %1412 }
 0x3bc   :  { %1060 = vadd.xlane.f32.xlu0 %v1413_v25 }
 0x449   :  { %v1061_v26 = vpop.xlane.xlu0 %1060 }
 0x44a   :  { %1414 = vlog2.f32 %v1061_v26 }
 0x454   :  { %v1415_v27 = vpop.eup %1414 }
 0x455   :  { %v1063_v28 = vmul.f32 0.6931472, %v1415_v27 }
 0x457   :  { %v1064_v29 = vsub.f32 %v1057_v23, %v1063_v28 }
 0x459   :  { %1065 = vst [vmem:[#allocation10] sm:$0xff] %v1064_v29 }
 0x45a   :  { %1515 = shalt.err (!%p1512_p8)
}
 0x45b   :  { %s1516_s10 = scalar_lea.hbm %s1668_s7, 128 }
 0x45c   :  { %p1517_p9 = scmp.ne.s32.totalorder %s1668_s7, %s1516_s10  ;;  %p1520_p10 = scmp.lt.u32.totalorder %s1516_s10, %s1668_s7 }
 0x45e   :  { %p1522_p11 = pnand %p1520_p10, %p1517_p9 }
 0x460   :  { %1525 = shalt.err (!%p1522_p11)
}
 0x461   :  { %1075 = dma.vmem_to_hbm [thread:$0]  %s1073_s30, 128, %s1668_s7, [#allocation4]  }
 0x462   :  { %1532 = dma.done.wait [#allocation4], 128  }
 0x463   :  { %1533 = vsyncadd [#allocation4], 4294967168 }
 0x464   :  { %1079 = vsyncpa [#allocation3], 1 }
 0x465   :  { %1080 = vsyncpa [#allocation6], 1 }
 0x466   :  { %1081 = vsyncpa [#allocation9], 1 }
 0x467   :  { %1082 = vsyncpa [#allocation4], 1 }

</bundles_post_ra>
